<compile_context>
chip_gen: v7x
topology: tpu7x:2x2x1
jax: 0.10.0
libtpu: 0.0.40
codegen_flags: <defaults>
</compile_context>

<pallas_src>
import functools

import jax
import jax.numpy as jnp
from jax.experimental import pallas as pl
from jax.experimental.pallas import tpu as pltpu


def _vmem_limit_bytes() -> int:
    """Generation-aware scoped-VMEM request (half of physical, clamped)."""
    try:
        cap = int(getattr(pltpu.get_tpu_info(), "vmem_capacity_bytes"))
    except Exception:
        cap = 64 * 1024 * 1024
    return int(min(max(cap // 2, 16 * 1024 * 1024), 96 * 1024 * 1024))


def _pick_tile(cw: int, n: int, itemsize: int, budget: int) -> int:
    """Largest multiple-of-128 divisor of cw whose double-buffered in+out blocks fit
    the budget; capped so the 'parallel' grid has >= 2 tiles when possible (v7x)."""
    per_col = 2 * (2 * n * itemsize) + 4 * n * 4   # dbl-buffered in+out + f32 temps
    max_t = max(128, (budget // per_col) // 128 * 128)
    cap = cw if cw < 256 else cw // 2
    best, t = 128, 128
    while t <= cw:
        if cw % t == 0 and t <= max_t and t <= cap:
            best = t
        t += 128
    return best


def _fused_tile_kernel(x_ref, y_ref, p_ref):
    """Per column tile: copy x into the output and emit a lane-dense partial std sum."""
    x = x_ref[...]                                   # (N, T), T % 128 == 0
    y_ref[...] = x.astype(y_ref.dtype)               # fused copy -> out channels [0, C)
    xf = x.astype(jnp.float32)
    n = xf.shape[0]
    mu = jnp.mean(xf, axis=0, keepdims=True)         # two-pass: batch mean first
    dev = xf - mu
    var = jnp.sum(dev * dev, axis=0, keepdims=True) / jnp.float32(n - 1)
    std = jnp.sqrt(var)                              # (1, T); NaN-preserving for N == 1
    t = std.shape[1]
    # Fold lanes into sublanes, reduce -> lane-dense (1, 128) partial sum.
    p_ref[...] = jnp.sum(std.reshape(t // 128, 128), axis=0, keepdims=True)


def _fill_kernel(mean_ref, aliased_ref, o_ref):
    """Write the scalar mean(std) into the extra channel; rest preserved via aliasing."""
    del aliased_ref                                  # aliased pass-1 output; untouched
    m = mean_ref[0, 0]
    o_ref[...] = jnp.full(o_ref.shape, m, dtype=o_ref.dtype)


def _fused_single_kernel(x_ref, o_ref, *, c_cols):
    """Whole problem resident in VMEM (small / non-128-aligned spatial maps)."""
    x = x_ref[...]                                   # (N, C*HW)
    o_ref[:, :c_cols] = x.astype(o_ref.dtype)
    xf = x.astype(jnp.float32)
    n = xf.shape[0]
    mu = jnp.mean(xf, axis=0, keepdims=True)
    dev = xf - mu
    var = jnp.sum(dev * dev, axis=0, keepdims=True) / jnp.float32(n - 1)
    std = jnp.sqrt(var)                              # (1, C*HW)
    m = jnp.sum(std) / jnp.float32(c_cols)           # scalar mean of std
    rows = o_ref.shape[0]
    fill_cols = o_ref.shape[1] - c_cols
    o_ref[:, c_cols:] = jnp.full((rows, fill_cols), m, dtype=o_ref.dtype)


@jax.jit
def minibatch_std(x: jax.Array) -> jax.Array:
    """x: (N, C, H, W) -> (N, C+1, H, W), matching torch Minibatch_std.forward."""
    n, c, h, w = x.shape
    hw = h * w
    cw = c * hw
    itemsize = x.dtype.itemsize
    out_cols = (c + 1) * hw
    vmem_limit = _vmem_limit_bytes()

    x2 = x.reshape(n, cw)                            # lane-dense flattening (free)

    if cw % 128 == 0 and hw % 128 == 0:
        # --- Pass 1: fused copy + per-tile partial std reduction ("parallel") ---
        t = _pick_tile(cw, n, itemsize, vmem_limit // 3)
        num_tiles = cw // t

        cost1 = pl.CostEstimate(
            flops=4 * n * cw,
            transcendentals=cw,
            bytes_accessed=2 * n * cw * itemsize + num_tiles * 128 * 4,
        )
        y, partials = pl.pallas_call(
            _fused_tile_kernel,
            out_shape=(
                jax.ShapeDtypeStruct((n, out_cols), x.dtype),
                jax.ShapeDtypeStruct((1, num_tiles * 128), jnp.float32),
            ),
            grid=(num_tiles,),
            in_specs=[pl.BlockSpec((n, t), lambda i: (0, i))],
            out_specs=(
                pl.BlockSpec((n, t), lambda i: (0, i)),
                pl.BlockSpec((1, 128), lambda i: (0, i)),
            ),
            compiler_params=pltpu.CompilerParams(
                dimension_semantics=("parallel",),
                vmem_limit_bytes=vmem_limit,
            ),
            cost_estimate=cost1,
        )(x2)

        mean = (jnp.sum(partials) / jnp.float32(cw)).reshape(1, 1).astype(jnp.float32)

        # --- Pass 2: tiny fill of channel C; pass-1 data preserved via aliasing ---
        cost2 = pl.CostEstimate(flops=0, transcendentals=0,
                                bytes_accessed=n * hw * itemsize)
        out2 = pl.pallas_call(
            _fill_kernel,
            out_shape=jax.ShapeDtypeStruct((n, out_cols), x.dtype),
            grid=(1,),
            in_specs=[
                pl.BlockSpec(memory_space=pltpu.MemorySpace.SMEM),   # (1,1) scalar mean
                pl.BlockSpec(memory_space=pl.ANY),                   # aliased pass-1 out
            ],
            out_specs=pl.BlockSpec((n, hw), lambda i: (0, c)),
            input_output_aliases={1: 0},
            compiler_params=pltpu.CompilerParams(
                dimension_semantics=("arbitrary",),
                vmem_limit_bytes=vmem_limit,
            ),
            cost_estimate=cost2,
        )(mean, y)
    else:
        # Small / non-lane-aligned spatial maps (ProGAN 512x4x4 -> hw=16): single
        # fused block, whole problem in VMEM, x read exactly once.
        # TODO(synk): very large tensors with non-128-multiple H*W would need a
        # tiled variant with a masked tail store; not needed for ProGAN shapes.
        cost = pl.CostEstimate(
            flops=4 * n * cw,
            transcendentals=cw,
            bytes_accessed=n * cw * itemsize + n * out_cols * itemsize,
        )
        out2 = pl.pallas_call(
            functools.partial(_fused_single_kernel, c_cols=cw),
            out_shape=jax.ShapeDtypeStruct((n, out_cols), x.dtype),
            in_specs=[pl.BlockSpec(memory_space=pltpu.MemorySpace.VMEM)],
            out_specs=pl.BlockSpec(memory_space=pltpu.MemorySpace.VMEM),
            compiler_params=pltpu.CompilerParams(vmem_limit_bytes=vmem_limit),
            cost_estimate=cost,
        )(x2)

    return out2.reshape(n, c + 1, h, w)


def minibatch_std_ref(x: jax.Array) -> jax.Array:
    """Pure-JAX reference mirroring the PyTorch module."""
    n = x.shape[0]
    std = jnp.std(x, axis=0, ddof=1)
    m = jnp.mean(std)
    mean_ch = jnp.full((n, 1, x.shape[2], x.shape[3]), m, dtype=x.dtype)
    return jnp.concatenate([x, mean_ch], axis=1)


if __name__ == "__main__":
    key = jax.random.PRNGKey(0)
    N, C, H, W = 2, 4, 16, 16
    x = jax.random.normal(key, (N, C, H, W), dtype=jnp.float32)

    out = jax.block_until_ready(minibatch_std(x))
    ref = minibatch_std_ref(x)

    assert out.shape == (N, C + 1, H, W)
    assert jnp.allclose(out, ref, atol=2e-5, rtol=1e-5), float(
        jnp.max(jnp.abs(out.astype(jnp.float32) - ref.astype(jnp.float32)))
    )

    print("KERNEL_OK")
</pallas_src>

<mosaic_0001>
module attributes {stable_mosaic.version = 11 : i64} {
  func.func @_fused_tile_kernel(%arg0: i32, %arg1: memref<2x512xf32, #tpu.memory_space<vmem>>, %arg2: memref<2x512xf32, #tpu.memory_space<vmem>>, %arg3: memref<1x128xf32, #tpu.memory_space<vmem>>) attributes {dimension_semantics = [#tpu.dimension_semantics<parallel>], iteration_bounds = array<i64: 2>, scalar_prefetch = 0 : i64, scratch_operands = 0 : i64, tpu.core_type = #tpu.core_type<tc>, window_params = [{transform_indices = @transform_0, window_bounds = array<i64: 2, 512>}, {transform_indices = @transform_1, window_bounds = array<i64: 2, 512>}, {transform_indices = @transform_2, window_bounds = array<i64: 1, 128>}]} {
    %c0 = arith.constant 0 : index
    %c0_0 = arith.constant 0 : index
    %0 = vector.load %arg1[%c0, %c0_0] : memref<2x512xf32, #tpu.memory_space<vmem>>, vector<2x512xf32>
    %c0_1 = arith.constant 0 : index
    %c0_2 = arith.constant 0 : index
    %1 = vector.load %arg2[%c0_1, %c0_2] : memref<2x512xf32, #tpu.memory_space<vmem>>, vector<2x512xf32>
    tpu.vector_store %arg2[%c0_1, %c0_2], %0 {strides = array<i32>} : memref<2x512xf32, #tpu.memory_space<vmem>>, vector<2x512xf32>,
    %cst = arith.constant dense<0.000000e+00> : vector<512xf32>
    %2 = vector.multi_reduction <add>, %0, %cst [0] : vector<2x512xf32> to vector<512xf32>
    %3 = vector.shape_cast %2 : vector<512xf32> to vector<1x512xf32>
    %cst_3 = arith.constant 2.000000e+00 : f32
    %4 = vector.broadcast %cst_3 : f32 to vector<1x512xf32>
    %5 = arith.divf %3, %4 : vector<1x512xf32>
    %6 = vector.broadcast %5 : vector<1x512xf32> to vector<2x512xf32>
    %7 = arith.subf %0, %6 : vector<2x512xf32>
    %8 = arith.mulf %7, %7 : vector<2x512xf32>
    %cst_4 = arith.constant dense<0.000000e+00> : vector<512xf32>
    %9 = vector.multi_reduction <add>, %8, %cst_4 [0] : vector<2x512xf32> to vector<512xf32>
    %10 = vector.shape_cast %9 : vector<512xf32> to vector<1x512xf32>
    %cst_5 = arith.constant 1.000000e+00 : f32
    %11 = vector.broadcast %cst_5 : f32 to vector<1x512xf32>
    %12 = arith.divf %10, %11 : vector<1x512xf32>
    %13 = math.sqrt %12 : vector<1x512xf32>
    %14 = vector.shape_cast %13 : vector<1x512xf32> to vector<4x128xf32>
    %cst_6 = arith.constant dense<0.000000e+00> : vector<128xf32>
    %15 = vector.multi_reduction <add>, %14, %cst_6 [0] : vector<4x128xf32> to vector<128xf32>
    %16 = vector.shape_cast %15 : vector<128xf32> to vector<1x128xf32>
    %c0_7 = arith.constant 0 : index
    %c0_8 = arith.constant 0 : index
    %17 = vector.load %arg3[%c0_7, %c0_8] : memref<1x128xf32, #tpu.memory_space<vmem>>, vector<1x128xf32>
    tpu.vector_store %arg3[%c0_7, %c0_8], %16 {strides = array<i32>} : memref<1x128xf32, #tpu.memory_space<vmem>>, vector<1x128xf32>,
    return
  }
  func.func @transform_0(%arg0: i32) -> (i32, i32) {
    %c0_i32 = arith.constant 0 : i32
    %c0_i32_0 = arith.constant 0 : i32
    return %c0_i32, %arg0 : i32, i32
  }
  func.func @transform_1(%arg0: i32) -> (i32, i32) {
    %c0_i32 = arith.constant 0 : i32
    %c0_i32_0 = arith.constant 0 : i32
    return %c0_i32, %arg0 : i32, i32
  }
  func.func @transform_2(%arg0: i32) -> (i32, i32) {
    %c0_i32 = arith.constant 0 : i32
    %c0_i32_0 = arith.constant 0 : i32
    return %c0_i32, %arg0 : i32, i32
  }
}

module attributes {stable_mosaic.version = 11 : i64} {
  func.func @_fill_kernel(%arg0: i32, %arg1: memref<1x1xf32, #tpu.memory_space<smem>>, %arg2: memref<2x1280xf32, #tpu.memory_space<any>>, %arg3: memref<2x256xf32, #tpu.memory_space<vmem>>) attributes {dimension_semantics = [#tpu.dimension_semantics<arbitrary>], iteration_bounds = array<i64: 1>, scalar_prefetch = 0 : i64, scratch_operands = 0 : i64, tpu.core_type = #tpu.core_type<tc>, window_params = [{transform_indices = @transform_0, window_bounds = array<i64: 1, 1>}, {}, {transform_indices = @transform_2, window_bounds = array<i64: 2, 256>}]} {
    %c0 = arith.constant 0 : index
    %c0_0 = arith.constant 0 : index
    %0 = memref.load %arg1[%c0, %c0_0] : memref<1x1xf32, #tpu.memory_space<smem>>
    %1 = vector.broadcast %0 : f32 to vector<2x256xf32>
    %c0_1 = arith.constant 0 : index
    %c0_2 = arith.constant 0 : index
    %2 = vector.load %arg3[%c0_1, %c0_2] : memref<2x256xf32, #tpu.memory_space<vmem>>, vector<2x256xf32>
    tpu.vector_store %arg3[%c0_1, %c0_2], %1 {strides = array<i32>} : memref<2x256xf32, #tpu.memory_space<vmem>>, vector<2x256xf32>,
    return
  }
  func.func @transform_0(%arg0: i32) -> (i32, i32) {
    %c0_i32 = arith.constant 0 : i32
    %c0_i32_0 = arith.constant 0 : i32
    %c0_i32_1 = arith.constant 0 : i32
    return %c0_i32, %c0_i32_0 : i32, i32
  }
  func.func @transform_2(%arg0: i32) -> (i32, i32) {
    %c0_i32 = arith.constant 0 : i32
    %c4_i32 = arith.constant 4 : i32
    %c0_i32_0 = arith.constant 0 : i32
    return %c0_i32, %c4_i32 : i32, i32
  }
}

</mosaic_0001>

<bundles_post_ra>
// kernel: minibatch_std.3
= control target key start
LH: loop header
LB: loop body
LE: loop exit
PB: predicated region body
PF: predicated region fallthrough
CT: control target
= control target key end

     0   :  { %s43_s0 = inlined_call_operand.<no memory space> [shape: f32[1,1], index: 0, kind: input, shape index: {}]   ;;  %s44_s1 = inlined_call_operand.vmem [shape: f32[2,1280], index: 1, kind: input, shape index: {}, may-alias: {1,2}]   ;;  %s45_s2 = inlined_call_operand.vmem [shape: f32[2,1280], index: 2, kind: output, shape index: {}, may-alias: {1,2}]  }
   0x1   :  { %v13_v0 = vstv %s43_s0 }
   0x2   :  { %21 = vst [vmem:[%s45_s2 + $0x10] sm:$0xf] %v13_v0 }

// kernel: minibatch_std.2
= control target key start
LH: loop header
LB: loop body
LE: loop exit
PB: predicated region body
PF: predicated region fallthrough
CT: control target
= control target key end

     0   :  { %s1303_s9 = smov 0   ;;  %s1305_s10 = smov 0   ;;  %s1790_s0 = inlined_call_operand.vmem [shape: f32[2,1024], index: 0, kind: input, shape index: {}]   ;;  %s1791_s1 = inlined_call_operand.vmem [shape: f32[2,1280], index: 1, kind: output, shape index: {0}]   ;;  %s1792_s2 = inlined_call_operand.vmem [shape: f32[1,256], index: 2, kind: output, shape index: {1}]  }
   0x1   :  { %s1307_s11 = smov 0  }
   0x2 LB: > { %s1314_s12 = sadd.s32 4294967295, %s1218_s11   ;;  %s1316_s13 = sadd.s32 1, %s1218_s11   ;;  %s1218_s11 = sphi %s1307_s11, %s1806_s11   ;;  %s1214_s10 = sphi %s1305_s10, %s1805_s10   ;;  %s1210_s9 = sphi %s1303_s9, %s1804_s9  }
   0x3   : > { %s43_s14 = ssub.s32 %s1218_s11, %s1316_s13  ;;  %s46_s15 = sadd.s32 1, %s1214_s10 }
   0x4   : > { %p44_p0 = scmp.eq.s32.totalorder %s43_s14, 0  ;;  %p56_p1 = scmp.ne.s32.totalorder %s1214_s10, %s1210_s9 }
   0x5   : > { %p57_p2 = scmp.eq.s32.totalorder %s1314_s12, 1  ;;  %p929_p3 = scmp.ge.s32.totalorder %s1218_s11, 1 }
   0x6   : > { %s1323_s16 = scalar_select %p44_p0, %s1214_s10, %s46_s15  }
   0x7   : > { %p1325_p4 = por %p57_p2, %p56_p1  ;;  %p116_p5 = scmp.lt.s32.totalorder %s1218_s11, 3 }
   0x9   : > { %p117_p6 = pnand %p929_p3, %p116_p5 }
   0xa   : > { %s132_s18 = sand.u32 (!%p117_p6), 1, %s1210_s9   ;;  %s1330_s19 = sshll.u32 (!%p117_p6), %s1314_s12, 2  ;;  %v161_v0 = vlaneseq (!%p117_p6)  ;;  %v1284_v1 = vmov (!%p117_p6), 1983009808   ;;  %vm178_vm0 = vcmask (!%p117_p6), 1041408   ;;  %vm343_vm9 = vcmask (!%p117_p6), 1043456  }
   0xb   : > { %120 = sbr.rel (%p117_p6) target bundleno = 275 (0x113), region = 24  ;;  %p141_p7 = scmp.lt.s32.totalorder (!%p117_p6), %s1330_s19, 7  ;;  %v159_v2 = vunpack.c.l.s4 (!%p117_p6), %v1284_v1 }
   0xc   : > { %s930_s20 = sshll.u32 (!%p117_p6), %s132_s18, 3  ;;  %v1333_v3 = vshrl.u32 (!%p117_p6), %v161_v0, 7  ;;  %p151_p8 = scmp.lt.s32.totalorder (!%p117_p6), %s1314_s12, 1 }
   0xd   : > { %v160_v4 = vunpack.c.0.s8 (!%p117_p6), %v159_v2  ;;  %s1342_s26 = scalar_lea.vmem (!%p117_p6), [#allocation2], %s930_s20  }
   0xf   : > { %v1337_v5 = vsub.s32 (!%p117_p6), %v160_v4, %v1333_v3 }
  0x12   : > { %s142_s21 = scalar_select %p141_p7, %s1330_s19, 7 }
  0x13   : > { %s152_s27 = scalar_select %p151_p8, %s1314_s12, 1 }
  0x14   : > { %s932_s22 = sshll.u32 %s142_s21, 1  ;;  %s363_s3 = ssub.s32 (%p1325_p4), 10, %s1330_s19 }
  0x15   : > { %s144_s25 = scalar_lea.vmem %s1790_s0, %s932_s22  ;;  %s153_s30 = scalar_lea.vmem %s1792_s2, %s152_s27 }
  0x16   : > { %v154_v6 = vld [vmem:[%s144_s25] sm:$0xff]  ;;  %s962_s4 = sshll.u32 (%p1325_p4), %s1314_s12, 3  ;;  %p364_p9 = scmp.lt.s32.totalorder (%p1325_p4), %s363_s3, 4 }
  0x17   : > { %155 = vst [vmem:[%s1342_s26] sm:$0xff] %v154_v6  ;;  %v157_v7 = vcombine.high %v154_v6, %v154_v6  ;;  %v164_v8 = vrot.slane %v154_v6, %v1337_v5  ;;  %s1375_s7 = scalar_lea.vmem (%p1325_p4), %s1791_s1, %s962_s4  }
  0x19   : > { %v171_v9 = vrot.slane %v157_v7, %v1337_v5  ;;  %v172_v10 = vcombine.high %v164_v8, %v164_v8  ;;  %v179_v11 = vsel %vm178_vm0, %v164_v8, 0.0 }
  0x1a   : > { %v180_v12 = vrot.slane %v179_v11, 4 }
  0x1b   : > { %v173_v13 = vcombine.high %v171_v9, %v171_v9  ;;  %v186_v14 = vsel %vm178_vm0, %v172_v10, 0.0  ;;  %v193_v15 = vsel %vm178_vm0, %v171_v9, 0.0 }
  0x1c   : > { %v181_v16 = vadd.f32 %v180_v12, %v179_v11  ;;  %v187_v17 = vrot.slane %v186_v14, 4  ;;  %v194_v18 = vrot.slane %v193_v15, 4 }
  0x1d   : > { %v200_v19 = vsel %vm178_vm0, %v173_v13, 0.0 }
  0x1e   : > { %v182_v20 = vrot.slane %v181_v16, 2  ;;  %v188_v21 = vadd.f32 %v187_v17, %v186_v14  ;;  %v195_v22 = vadd.f32 %v194_v18, %v193_v15  ;;  %v201_v23 = vrot.slane %v200_v19, 4 }
  0x20   : > { %v183_v24 = vadd.f32 %v182_v20, %v181_v16  ;;  %v189_v25 = vrot.slane %v188_v21, 2  ;;  %v196_v26 = vrot.slane %v195_v22, 2  ;;  %v202_v27 = vadd.f32 %v201_v23, %v200_v19 }
  0x22   : > { %v184_v28 = vrot.slane %v183_v24, 1  ;;  %v190_v29 = vadd.f32 %v189_v25, %v188_v21  ;;  %v197_v30 = vadd.f32 %v196_v26, %v195_v22  ;;  %v203_v31 = vrot.slane %v202_v27, 2 }
  0x23   : > { %v1285_v25 = vmov 1966171168  }
  0x24   : > { %v185_v32 = vadd.f32 %v184_v28, %v183_v24  ;;  %v191_v33 = vrot.slane %v190_v29, 1  ;;  %v198_v34 = vrot.slane %v197_v30, 1  ;;  %v204_v35 = vadd.f32 %v203_v31, %v202_v27 }
  0x25   : > { %v337_v26 = vunpack.c.l.s4 %v1285_v25 }
  0x26   : > { %v192_v36 = vadd.f32 %v191_v33, %v190_v29  ;;  %v199_v37 = vadd.f32 %v198_v34, %v197_v30  ;;  %v205_v38 = vrot.slane %v204_v35, 1  ;;  %v208_v39 = vmul.f32 0.5, %v185_v32 }
  0x28   : > { %v206_v40 = vadd.f32 %v205_v38, %v204_v35  ;;  %v209_v41 = vmul.f32 0.5, %v192_v36  ;;  %v210_v42 = vmul.f32 0.5, %v199_v37 }
  0x2a   : > { %v211_v43 = vmul.f32 0.5, %v206_v40  ;;  %v216_v44 = vcombine.low %v208_v39, %v209_v41 }
  0x2c   : > { %v217_v45 = vcombine.low %v210_v42, %v211_v43  ;;  %v224_v46 = vrot.slane %v216_v44, %v1337_v5  ;;  %v338_v44 = vunpack.c.0.s8 %v337_v26 }
  0x2e   : > { %v231_v47 = vrot.slane %v217_v45, %v1337_v5 }
  0x30   : > { %v232_v48 = vcombine.low %v224_v46, %v231_v47 }
  0x32   : > { %v234_v49 = vsub.f32 %v154_v6, %v232_v48 }
  0x34   : > { %v235_v50 = vmul.f32 %v234_v49, %v234_v49  ;;  %v341_v49 = vsub.s32 %v338_v44, %v1333_v3 }
  0x36   : > { %v237_v51 = vcombine.high %v235_v50, %v235_v50  ;;  %v244_v52 = vrot.slane %v235_v50, %v1337_v5 }
  0x38   : > { %v251_v53 = vrot.slane %v237_v51, %v1337_v5  ;;  %v252_v54 = vcombine.high %v244_v52, %v244_v52  ;;  %v258_v55 = vsel %vm178_vm0, %v244_v52, 0.0 }
  0x39   : > { %v259_v56 = vrot.slane %v258_v55, 4 }
  0x3a   : > { %v253_v57 = vcombine.high %v251_v53, %v251_v53  ;;  %v265_v58 = vsel %vm178_vm0, %v252_v54, 0.0  ;;  %v272_v59 = vsel %vm178_vm0, %v251_v53, 0.0 }
  0x3b   : > { %v260_v60 = vadd.f32 %v259_v56, %v258_v55  ;;  %v266_v61 = vrot.slane %v265_v58, 4  ;;  %v273_v62 = vrot.slane %v272_v59, 4 }
  0x3c   : > { %v279_v63 = vsel %vm178_vm0, %v253_v57, 0.0 }
  0x3d   : > { %v261_v0 = vrot.slane %v260_v60, 2  ;;  %v267_v1 = vadd.f32 %v266_v61, %v265_v58  ;;  %v274_v2 = vadd.f32 %v273_v62, %v272_v59  ;;  %v280_v4 = vrot.slane %v279_v63, 4 }
  0x3f   : > { %v262_v6 = vadd.f32 %v261_v0, %v260_v60  ;;  %v268_v7 = vrot.slane %v267_v1, 2  ;;  %v275_v8 = vrot.slane %v274_v2, 2  ;;  %v281_v9 = vadd.f32 %v280_v4, %v279_v63 }
  0x41   : > { %v263_v10 = vrot.slane %v262_v6, 1  ;;  %v269_v11 = vadd.f32 %v268_v7, %v267_v1  ;;  %v276_v12 = vadd.f32 %v275_v8, %v274_v2  ;;  %v282_v13 = vrot.slane %v281_v9, 2 }
  0x43   : > { %v264_v14 = vadd.f32 %v263_v10, %v262_v6  ;;  %v270_v15 = vrot.slane %v269_v11, 1  ;;  %v277_v16 = vrot.slane %v276_v12, 1  ;;  %v283_v17 = vadd.f32 %v282_v13, %v281_v9 }
  0x45   : > { %v271_v18 = vadd.f32 %v270_v15, %v269_v11  ;;  %v278_v19 = vadd.f32 %v277_v16, %v276_v12  ;;  %v284_v20 = vrot.slane %v283_v17, 1  ;;  %1124 = vrsqrt.f32 %v264_v14 }
  0x46   : > { %vm288_vm1 = vcmp.eq.f32.partialorder %v264_v14, inf  ;;  %v291_v23 = vand.u32 2147483648, %v264_v14  ;;  %vm290_vm2 = vcmp.eq.f32.partialorder %v264_v14, 0.0 }
  0x47   : > { %v285_v21 = vadd.f32 %v284_v20, %v283_v17  ;;  %1126 = vrsqrt.f32 %v271_v18  ;;  %vm295_vm3 = vcmp.eq.f32.partialorder %v271_v18, inf  ;;  %vm297_vm4 = vcmp.eq.f32.partialorder %v271_v18, 0.0 }
  0x48   : > { %1128 = vrsqrt.f32 %v278_v19  ;;  %v298_v28 = vand.u32 2147483648, %v271_v18  ;;  %vm302_vm5 = vcmp.eq.f32.partialorder %v278_v19, inf  ;;  %vm304_vm6 = vcmp.eq.f32.partialorder %v278_v19, 0.0 }
  0x49   : > { %1130 = vrsqrt.f32 %v285_v21  ;;  %v305_v32 = vand.u32 2147483648, %v278_v19  ;;  %vm309_vm7 = vcmp.eq.f32.partialorder %v285_v21, inf  ;;  %v312_v36 = vand.u32 2147483648, %v285_v21 }
  0x4a   : > { %vm311_vm8 = vcmp.eq.f32.partialorder %v285_v21, 0.0 }
  0x4f   : > { %v1125_v22 = vpop.eup %1124 }
  0x50   : > { %v287_v24 = vmul.f32 %v1125_v22, %v264_v14 }
  0x51   : > { %v1127_v27 = vpop.eup %1126 }
  0x52   : > { %v1129_v29 = vpop.eup %1128  ;;  %v289_v30 = vsel %vm288_vm1, %v264_v14, %v287_v24  ;;  %v294_v31 = vmul.f32 %v1127_v27, %v271_v18 }
  0x53   : > { %v1131_v33 = vpop.eup %1130  ;;  %v292_v34 = vsel %vm290_vm2, %v291_v23, %v289_v30  ;;  %v301_v35 = vmul.f32 %v1129_v29, %v278_v19 }
  0x54   : > { %v296_v37 = vsel %vm295_vm3, %v271_v18, %v294_v31  ;;  %v308_v38 = vmul.f32 %v1131_v33, %v285_v21 }
  0x55   : > { %v299_v39 = vsel %vm297_vm4, %v298_v28, %v296_v37  ;;  %v303_v40 = vsel %vm302_vm5, %v278_v19, %v301_v35 }
  0x56   : > { %v306_v41 = vsel %vm304_vm6, %v305_v32, %v303_v40  ;;  %v310_v42 = vsel %vm309_vm7, %v285_v21, %v308_v38  ;;  %v318_v43 = vcombine.low %v292_v34, %v299_v39 }
  0x57   : > { %v313_v45 = vsel %vm311_vm8, %v312_v36, %v310_v42 }
  0x58   : > { %v319_v46 = vcombine.low %v306_v41, %v313_v45  ;;  %v326_v47 = vrot.slane %v318_v43, %v1337_v5 }
  0x5a   : > { %v333_v48 = vrot.slane %v319_v46, %v1337_v5 }
  0x5c   : > { %v334_v50 = vcombine.low %v326_v47, %v333_v48 }
  0x5e   : > { %v342_v51 = vrot.slane %v334_v50, %v341_v49 }
  0x60   : > { %v344_v52 = vsel %vm343_vm9, %v342_v51, 0.0 }
  0x61   : > { %v345_v53 = vrot.slane %v344_v52, 4 }
  0x63   : > { %v346_v54 = vadd.f32 %v345_v53, %v344_v52 }
  0x65   : > { %v347_v55 = vrot.slane %v346_v54, 2 }
  0x67   : > { %v348_v56 = vadd.f32 %v347_v55, %v346_v54  ;;  %361 = sbr.rel (!%p1325_p4) target bundleno = 275 (0x113), region = 28 }
  0x69   : > { %v349_v57 = vrot.slane %v348_v56, 1 }
  0x6b   : > { %v350_v58 = vadd.f32 %v349_v57, %v348_v56 }
  0x6d   : > { %351 = vst [vmem:[%s153_s30] sm:$0x1] %v350_v58 }
  0x6e   : > { %s1808_s3 = smov (!%p364_p9, %s363_s3), 4 }
  0x6f   : > { %s935_s8 = sshll.u32 %s1808_s3, 5  ;;  %s1377_s9 = sshll.u32 %s1808_s3, 1 }
  0x70   : > { %p939_p10 = scmp.eq.s32.totalorder %s935_s8, 0 }
  0x71   : > { %p374_p11 = scmp.lt.u32.totalorder (!%p939_p10), %s1377_s9, 8 }
  0x72   : > { %373 = sbr.rel (%p939_p10) target bundleno = 275 (0x113), region = 32 }
  0x79   : > { %377 = sbr.rel (%p374_p11) target bundleno = 266 (0x10a), region = 36  ;;  %s1381_s11 = sand.u32 (!%p374_p11), 7, %s1377_s9  }
  0x7a   : > { %p393_p12 = scmp.eq.s32.totalorder (!%p374_p11), %s1381_s11, 0  ;;  %p940_p13 = scmp.ne.s32.totalorder (!%p374_p11), %s1381_s11, 0 }
  0x80   : > { %396 = sbr.rel (%p940_p13) target bundleno = 195 (0xc3), region = 51  ;;  %s397_s12 = sshrl.u32 (!%p940_p13), %s1377_s9, 3 }
  0x81   : > { %s1388_s14 = sshrl.u32 (!%p940_p13), %s397_s12, 6 }
  0x82   : > { %p941_p0 = scmp.le.s32.totalorder (!%p940_p13), %s1388_s14, 0 }
  0x87   : > { %845 = sbr.rel (%p941_p0) target bundleno = 175 (0xaf), region = 144  ;;  %s1794_s15 = smov (!%p941_p0), %s1375_s7 }
  0x88   : > { %s1795_s17 = smov (!%p941_p0), %s1342_s26  ;;  %s1397_s18 = smov (!%p941_p0), 0  }
  0x89   : > { %s1399_s19 = smov (!%p941_p0), 0  }
  0x8e LB: >> { %v410_v3 = vld [vmem:[%s1226_s17] sm:$0xff]  ;;  %v412_v5 = vld [vmem:[%s1226_s17 + $0x8] sm:$0xff]  ;;  %v414_v59 = vld [vmem:[%s1226_s17 + $0x10] sm:$0xff]  ;;  %s538_s20 = sadd.s32 1, %s1230_s18  ;;  %s404_s19 = sadd.s32 1, %s1234_s19   ;;  %s1234_s19 = sphi %s1399_s19, %s404_s19   ;;  %s1230_s18 = sphi %s1397_s18, %s1798_s18   ;;  %s1226_s17 = sphi %s1795_s17, %s1797_s17   ;;  %s1222_s15 = sphi %s1794_s15, %s1796_s15  }
  0x8f   : >> { %411 = vst [vmem:[%s1222_s15] sm:$0xff] %v410_v3  ;;  %413 = vst [vmem:[%s1222_s15 + $0x8] sm:$0xff] %v412_v5  ;;  %v416_v60 = vld [vmem:[%s1226_s17 + $0x18] sm:$0xff]  ;;  %v418_v61 = vld [vmem:[%s1226_s17 + $0x20] sm:$0xff]  ;;  %p539_p1 = scmp.ge.s32.totalorder %s538_s20, %s1388_s14  ;;  %p403_p2 = scmp.ge.s32.totalorder %s404_s19, %s1388_s14 }
  0x90   : >> { %415 = vst [vmem:[%s1222_s15 + $0x10] sm:$0xff] %v414_v59  ;;  %v420_v62 = vld [vmem:[%s1226_s17 + $0x28] sm:$0xff]  ;;  %417 = vst [vmem:[%s1222_s15 + $0x18] sm:$0xff] %v416_v60  ;;  %v422_v63 = vld [vmem:[%s1226_s17 + $0x30] sm:$0xff] }
  0x91   : >> { %419 = vst [vmem:[%s1222_s15 + $0x20] sm:$0xff] %v418_v61  ;;  %421 = vst [vmem:[%s1222_s15 + $0x28] sm:$0xff] %v420_v62  ;;  %v424_v0 = vld [vmem:[%s1226_s17 + $0x38] sm:$0xff]  ;;  %v426_v1 = vld [vmem:[%s1226_s17 + $0x40] sm:$0xff]  ;;  %s1810_s20 = smov (%p539_p1, %s538_s20), 0 }
  0x92   : >> { %423 = vst [vmem:[%s1222_s15 + $0x30] sm:$0xff] %v422_v63  ;;  %425 = vst [vmem:[%s1222_s15 + $0x38] sm:$0xff] %v424_v0  ;;  %v428_v2 = vld [vmem:[%s1226_s17 + $0x48] sm:$0xff]  ;;  %v430_v4 = vld [vmem:[%s1226_s17 + $0x50] sm:$0xff]  ;;  %s942_s21 = sshll.u32 %s1810_s20, 9  ;;  %s1798_s18 = smov %s1810_s20 }
  0x93   : >> { %427 = vst [vmem:[%s1222_s15 + $0x40] sm:$0xff] %v426_v1  ;;  %v432_v6 = vld [vmem:[%s1226_s17 + $0x58] sm:$0xff]  ;;  %429 = vst [vmem:[%s1222_s15 + $0x48] sm:$0xff] %v428_v2  ;;  %v434_v7 = vld [vmem:[%s1226_s17 + $0x60] sm:$0xff]  ;;  %s1455_s22 = scalar_lea.vmem %s1342_s26, %s942_s21 [#allocation2]   ;;  %s1458_s23 = scalar_lea.vmem %s1375_s7, %s942_s21  }
  0x94   : >> { %431 = vst [vmem:[%s1222_s15 + $0x50] sm:$0xff] %v430_v4  ;;  %433 = vst [vmem:[%s1222_s15 + $0x58] sm:$0xff] %v432_v6  ;;  %v436_v8 = vld [vmem:[%s1226_s17 + $0x68] sm:$0xff]  ;;  %v438_v9 = vld [vmem:[%s1226_s17 + $0x70] sm:$0xff] }
  0x95   : >> { %435 = vst [vmem:[%s1222_s15 + $0x60] sm:$0xff] %v434_v7  ;;  %437 = vst [vmem:[%s1222_s15 + $0x68] sm:$0xff] %v436_v8  ;;  %v440_v10 = vld [vmem:[%s1226_s17 + $0x78] sm:$0xff]  ;;  %v442_v11 = vld [vmem:[%s1226_s17 + $0x80] sm:$0xff] }
  0x96   : >> { %439 = vst [vmem:[%s1222_s15 + $0x70] sm:$0xff] %v438_v9  ;;  %v444_v12 = vld [vmem:[%s1226_s17 + $0x88] sm:$0xff]  ;;  %441 = vst [vmem:[%s1222_s15 + $0x78] sm:$0xff] %v440_v10  ;;  %v446_v13 = vld [vmem:[%s1226_s17 + $0x90] sm:$0xff] }
  0x97   : >> { %443 = vst [vmem:[%s1222_s15 + $0x80] sm:$0xff] %v442_v11  ;;  %445 = vst [vmem:[%s1222_s15 + $0x88] sm:$0xff] %v444_v12  ;;  %v448_v14 = vld [vmem:[%s1226_s17 + $0x98] sm:$0xff]  ;;  %v450_v15 = vld [vmem:[%s1226_s17 + $0xa0] sm:$0xff] }
  0x98   : >> { %447 = vst [vmem:[%s1222_s15 + $0x90] sm:$0xff] %v446_v13  ;;  %449 = vst [vmem:[%s1222_s15 + $0x98] sm:$0xff] %v448_v14  ;;  %v452_v16 = vld [vmem:[%s1226_s17 + $0xa8] sm:$0xff]  ;;  %v454_v17 = vld [vmem:[%s1226_s17 + $0xb0] sm:$0xff] }
  0x99   : >> { %451 = vst [vmem:[%s1222_s15 + $0xa0] sm:$0xff] %v450_v15  ;;  %v456_v18 = vld [vmem:[%s1226_s17 + $0xb8] sm:$0xff]  ;;  %453 = vst [vmem:[%s1222_s15 + $0xa8] sm:$0xff] %v452_v16  ;;  %v458_v19 = vld [vmem:[%s1226_s17 + $0xc0] sm:$0xff] }
  0x9a   : >> { %455 = vst [vmem:[%s1222_s15 + $0xb0] sm:$0xff] %v454_v17  ;;  %457 = vst [vmem:[%s1222_s15 + $0xb8] sm:$0xff] %v456_v18  ;;  %v460_v20 = vld [vmem:[%s1226_s17 + $0xc8] sm:$0xff]  ;;  %v462_v21 = vld [vmem:[%s1226_s17 + $0xd0] sm:$0xff] }
  0x9b   : >> { %459 = vst [vmem:[%s1222_s15 + $0xc0] sm:$0xff] %v458_v19  ;;  %461 = vst [vmem:[%s1222_s15 + $0xc8] sm:$0xff] %v460_v20  ;;  %v464_v22 = vld [vmem:[%s1226_s17 + $0xd8] sm:$0xff]  ;;  %v466_v23 = vld [vmem:[%s1226_s17 + $0xe0] sm:$0xff] }
  0x9c   : >> { %463 = vst [vmem:[%s1222_s15 + $0xd0] sm:$0xff] %v462_v21  ;;  %v468_v24 = vld [vmem:[%s1226_s17 + $0xe8] sm:$0xff]  ;;  %465 = vst [vmem:[%s1222_s15 + $0xd8] sm:$0xff] %v464_v22  ;;  %v470_v25 = vld [vmem:[%s1226_s17 + $0xf0] sm:$0xff] }
  0x9d   : >> { %467 = vst [vmem:[%s1222_s15 + $0xe0] sm:$0xff] %v466_v23  ;;  %469 = vst [vmem:[%s1222_s15 + $0xe8] sm:$0xff] %v468_v24  ;;  %v472_v26 = vld [vmem:[%s1226_s17 + $0xf8] sm:$0xff]  ;;  %v474_v27 = vld [vmem:[%s1226_s17 + $0x100] sm:$0xff] }
  0x9e   : >> { %471 = vst [vmem:[%s1222_s15 + $0xf0] sm:$0xff] %v470_v25  ;;  %473 = vst [vmem:[%s1222_s15 + $0xf8] sm:$0xff] %v472_v26  ;;  %v476_v28 = vld [vmem:[%s1226_s17 + $0x108] sm:$0xff]  ;;  %v478_v29 = vld [vmem:[%s1226_s17 + $0x110] sm:$0xff] }
  0x9f   : >> { %475 = vst [vmem:[%s1222_s15 + $0x100] sm:$0xff] %v474_v27  ;;  %v480_v30 = vld [vmem:[%s1226_s17 + $0x118] sm:$0xff]  ;;  %477 = vst [vmem:[%s1222_s15 + $0x108] sm:$0xff] %v476_v28  ;;  %v482_v31 = vld [vmem:[%s1226_s17 + $0x120] sm:$0xff] }
  0xa0   : >> { %479 = vst [vmem:[%s1222_s15 + $0x110] sm:$0xff] %v478_v29  ;;  %481 = vst [vmem:[%s1222_s15 + $0x118] sm:$0xff] %v480_v30  ;;  %v484_v32 = vld [vmem:[%s1226_s17 + $0x128] sm:$0xff]  ;;  %v486_v33 = vld [vmem:[%s1226_s17 + $0x130] sm:$0xff] }
  0xa1   : >> { %483 = vst [vmem:[%s1222_s15 + $0x120] sm:$0xff] %v482_v31  ;;  %485 = vst [vmem:[%s1222_s15 + $0x128] sm:$0xff] %v484_v32  ;;  %v488_v34 = vld [vmem:[%s1226_s17 + $0x138] sm:$0xff]  ;;  %v490_v35 = vld [vmem:[%s1226_s17 + $0x140] sm:$0xff] }
  0xa2   : >> { %487 = vst [vmem:[%s1222_s15 + $0x130] sm:$0xff] %v486_v33  ;;  %v492_v36 = vld [vmem:[%s1226_s17 + $0x148] sm:$0xff]  ;;  %489 = vst [vmem:[%s1222_s15 + $0x138] sm:$0xff] %v488_v34  ;;  %v494_v37 = vld [vmem:[%s1226_s17 + $0x150] sm:$0xff] }
  0xa3   : >> { %491 = vst [vmem:[%s1222_s15 + $0x140] sm:$0xff] %v490_v35  ;;  %493 = vst [vmem:[%s1222_s15 + $0x148] sm:$0xff] %v492_v36  ;;  %v496_v38 = vld [vmem:[%s1226_s17 + $0x158] sm:$0xff]  ;;  %v498_v39 = vld [vmem:[%s1226_s17 + $0x160] sm:$0xff] }
  0xa4   : >> { %495 = vst [vmem:[%s1222_s15 + $0x150] sm:$0xff] %v494_v37  ;;  %497 = vst [vmem:[%s1222_s15 + $0x158] sm:$0xff] %v496_v38  ;;  %v500_v40 = vld [vmem:[%s1226_s17 + $0x168] sm:$0xff]  ;;  %v502_v41 = vld [vmem:[%s1226_s17 + $0x170] sm:$0xff] }
  0xa5   : >> { %499 = vst [vmem:[%s1222_s15 + $0x160] sm:$0xff] %v498_v39  ;;  %v504_v42 = vld [vmem:[%s1226_s17 + $0x178] sm:$0xff]  ;;  %501 = vst [vmem:[%s1222_s15 + $0x168] sm:$0xff] %v500_v40  ;;  %v506_v43 = vld [vmem:[%s1226_s17 + $0x180] sm:$0xff] }
  0xa6   : >> { %503 = vst [vmem:[%s1222_s15 + $0x170] sm:$0xff] %v502_v41  ;;  %505 = vst [vmem:[%s1222_s15 + $0x178] sm:$0xff] %v504_v42  ;;  %v508_v44 = vld [vmem:[%s1226_s17 + $0x188] sm:$0xff]  ;;  %v510_v45 = vld [vmem:[%s1226_s17 + $0x190] sm:$0xff] }
  0xa7   : >> { %507 = vst [vmem:[%s1222_s15 + $0x180] sm:$0xff] %v506_v43  ;;  %509 = vst [vmem:[%s1222_s15 + $0x188] sm:$0xff] %v508_v44  ;;  %v512_v46 = vld [vmem:[%s1226_s17 + $0x198] sm:$0xff]  ;;  %v514_v47 = vld [vmem:[%s1226_s17 + $0x1a0] sm:$0xff] }
  0xa8   : >> { %511 = vst [vmem:[%s1222_s15 + $0x190] sm:$0xff] %v510_v45  ;;  %v516_v48 = vld [vmem:[%s1226_s17 + $0x1a8] sm:$0xff]  ;;  %513 = vst [vmem:[%s1222_s15 + $0x198] sm:$0xff] %v512_v46  ;;  %v518_v49 = vld [vmem:[%s1226_s17 + $0x1b0] sm:$0xff]  ;;  %406 = sbr.rel (!%p403_p2) target bundleno = 142 (0x8e), region = 150 }
  0xa9   : >> { %515 = vst [vmem:[%s1222_s15 + $0x1a0] sm:$0xff] %v514_v47  ;;  %517 = vst [vmem:[%s1222_s15 + $0x1a8] sm:$0xff] %v516_v48  ;;  %v520_v50 = vld [vmem:[%s1226_s17 + $0x1b8] sm:$0xff]  ;;  %v522_v51 = vld [vmem:[%s1226_s17 + $0x1c0] sm:$0xff] }
  0xaa   : >> { %519 = vst [vmem:[%s1222_s15 + $0x1b0] sm:$0xff] %v518_v49  ;;  %521 = vst [vmem:[%s1222_s15 + $0x1b8] sm:$0xff] %v520_v50  ;;  %v524_v52 = vld [vmem:[%s1226_s17 + $0x1c8] sm:$0xff]  ;;  %v526_v53 = vld [vmem:[%s1226_s17 + $0x1d0] sm:$0xff] }
  0xab   : >> { %523 = vst [vmem:[%s1222_s15 + $0x1c0] sm:$0xff] %v522_v51  ;;  %v528_v54 = vld [vmem:[%s1226_s17 + $0x1d8] sm:$0xff]  ;;  %525 = vst [vmem:[%s1222_s15 + $0x1c8] sm:$0xff] %v524_v52  ;;  %v530_v55 = vld [vmem:[%s1226_s17 + $0x1e0] sm:$0xff] }
  0xac   : >> { %527 = vst [vmem:[%s1222_s15 + $0x1d0] sm:$0xff] %v526_v53  ;;  %529 = vst [vmem:[%s1222_s15 + $0x1d8] sm:$0xff] %v528_v54  ;;  %v532_v56 = vld [vmem:[%s1226_s17 + $0x1e8] sm:$0xff]  ;;  %v534_v57 = vld [vmem:[%s1226_s17 + $0x1f0] sm:$0xff] }
  0xad   : >> { %531 = vst [vmem:[%s1222_s15 + $0x1e0] sm:$0xff] %v530_v55  ;;  %533 = vst [vmem:[%s1222_s15 + $0x1e8] sm:$0xff] %v532_v56  ;;  %v536_v58 = vld [vmem:[%s1226_s17 + $0x1f8] sm:$0xff]  ;;  %s1797_s17 = smov %s1455_s22 }
  0xae   : >> { %535 = vst [vmem:[%s1222_s15 + $0x1f0] sm:$0xff] %v534_v57  ;;  %537 = vst [vmem:[%s1222_s15 + $0x1f8] sm:$0xff] %v536_v58  ;;  %s1796_s15 = smov %s1458_s23 }
  0xaf PF: > { %s1564_s24 = sand.u32 63, %s397_s12   ;;  %s963_s25 = sshll.u32 %s1388_s14, 13 }
  0xb0   : > { %s549_s27 = sshra.s32 %s963_s25, 4  ;;  %p947_p3 = scmp.le.s32.totalorder %s1564_s24, 0 }
  0xb1   : > { %s550_s28 = scalar_lea.vmem %s1342_s26, %s549_s27 [#allocation2]   ;;  %s553_s29 = scalar_lea.vmem %s1375_s7, %s549_s27  }
  0xb2   : > { %859 = sbr.rel (%p947_p3) target bundleno = 195 (0xc3), region = 155  ;;  %s1236_s30 = smov (!%p947_p3), %s553_s29  }
  0xb3   : > { %s1240_s3 = smov (!%p947_p3), %s550_s28   ;;  %s1244_s4 = smov (!%p947_p3), 0  }
  0xb4   : > { %s1248_s5 = smov (!%p947_p3), 0  }
  0xb9 LB: >> { %v565_v3 = vld [vmem:[%s1242_s3] sm:$0xff]  ;;  %s567_s6 = sadd.s32 1, %s1246_s4  ;;  %s559_s5 = sadd.s32 1, %s1250_s5   ;;  %s1250_s5 = sphi %s1248_s5, %s559_s5   ;;  %s1246_s4 = sphi %s1244_s4, %s1245_s4   ;;  %s1242_s3 = sphi %s1240_s3, %s572_s3   ;;  %s1238_s30 = sphi %s1236_s30, %s573_s30  }
  0xba   : >> { %566 = vst [vmem:[%s1238_s30] sm:$0xff] %v565_v3  ;;  %p568_p4 = scmp.ge.s32.totalorder %s567_s6, %s1564_s24  ;;  %p558_p5 = scmp.ge.s32.totalorder %s559_s5, %s1564_s24 }
  0xbc   : >> { %s1812_s6 = smov (%p568_p4, %s567_s6), 0  ;;  %561 = sbr.rel (!%p558_p5) target bundleno = 185 (0xb9), region = 161 }
  0xbd   : >> { %s948_s8 = sshll.u32 %s1812_s6, 3  ;;  %s1245_s4 = smov %s1812_s6  }
  0xbe   : >> { %s572_s3 = scalar_lea.vmem %s550_s28, %s948_s8 [#allocation2]   ;;  %s573_s30 = scalar_lea.vmem %s553_s29, %s948_s8  }
  0xc3 PF: > { %576 = sbr.rel (%p393_p12) target bundleno = 266 (0x10a), region = 69  ;;  %s1576_s12 = ssub.s32 (!%p393_p12), %s1377_s9, %s1381_s11 }
  0xc4   : > { %s582_s14 = sshrl.u32 (!%p393_p12), %s1377_s9, 3  ;;  %s579_s15 = scalar_lea.vmem (!%p393_p12), %s1342_s26, %s1576_s12 [#allocation2] }
  0xc5   : > { %s581_s17 = scalar_lea.vmem (!%p393_p12), %s1375_s7, %s1576_s12  ;;  %s1585_s18 = sshrl.u32 (!%p393_p12), %s582_s14, 6 }
  0xc6   : > { %p950_p6 = scmp.le.s32.totalorder (!%p393_p12), %s1585_s18, 0 }
  0xca   : > { %873 = sbr.rel (%p950_p6) target bundleno = 242 (0xf2), region = 166  ;;  %s1799_s19 = smov (!%p950_p6), %s1375_s7 }
  0xcb   : > { %s1800_s20 = smov (!%p950_p6), %s1342_s26  ;;  %s1594_s21 = smov (!%p950_p6), 0  }
  0xcc   : > { %s1596_s22 = smov (!%p950_p6), 0  }
  0xd1 LB: >> { %v595_v5 = vld [vmem:[%s1258_s20] sm:$0xff]  ;;  %v597_v59 = vld [vmem:[%s1258_s20 + $0x8] sm:$0xff]  ;;  %v599_v60 = vld [vmem:[%s1258_s20 + $0x10] sm:$0xff]  ;;  %s723_s23 = sadd.s32 1, %s1262_s21  ;;  %s589_s22 = sadd.s32 1, %s1266_s22   ;;  %s1266_s22 = sphi %s1596_s22, %s589_s22   ;;  %s1262_s21 = sphi %s1594_s21, %s1803_s21   ;;  %s1258_s20 = sphi %s1800_s20, %s1802_s20   ;;  %s1254_s19 = sphi %s1799_s19, %s1801_s19  }
  0xd2   : >> { %596 = vst [vmem:[%s1254_s19] sm:$0xff] %v595_v5  ;;  %598 = vst [vmem:[%s1254_s19 + $0x8] sm:$0xff] %v597_v59  ;;  %v601_v61 = vld [vmem:[%s1258_s20 + $0x18] sm:$0xff]  ;;  %v603_v62 = vld [vmem:[%s1258_s20 + $0x20] sm:$0xff]  ;;  %p724_p7 = scmp.ge.s32.totalorder %s723_s23, %s1585_s18  ;;  %p588_p8 = scmp.ge.s32.totalorder %s589_s22, %s1585_s18 }
  0xd3   : >> { %600 = vst [vmem:[%s1254_s19 + $0x10] sm:$0xff] %v599_v60  ;;  %v605_v63 = vld [vmem:[%s1258_s20 + $0x28] sm:$0xff]  ;;  %602 = vst [vmem:[%s1254_s19 + $0x18] sm:$0xff] %v601_v61  ;;  %v607_v0 = vld [vmem:[%s1258_s20 + $0x30] sm:$0xff] }
  0xd4   : >> { %604 = vst [vmem:[%s1254_s19 + $0x20] sm:$0xff] %v603_v62  ;;  %606 = vst [vmem:[%s1254_s19 + $0x28] sm:$0xff] %v605_v63  ;;  %v609_v1 = vld [vmem:[%s1258_s20 + $0x38] sm:$0xff]  ;;  %v611_v2 = vld [vmem:[%s1258_s20 + $0x40] sm:$0xff]  ;;  %s1814_s23 = smov (%p724_p7, %s723_s23), 0 }
  0xd5   : >> { %608 = vst [vmem:[%s1254_s19 + $0x30] sm:$0xff] %v607_v0  ;;  %610 = vst [vmem:[%s1254_s19 + $0x38] sm:$0xff] %v609_v1  ;;  %v613_v4 = vld [vmem:[%s1258_s20 + $0x48] sm:$0xff]  ;;  %v615_v6 = vld [vmem:[%s1258_s20 + $0x50] sm:$0xff]  ;;  %s951_s24 = sshll.u32 %s1814_s23, 9  ;;  %s1803_s21 = smov %s1814_s23 }
  0xd6   : >> { %612 = vst [vmem:[%s1254_s19 + $0x40] sm:$0xff] %v611_v2  ;;  %v617_v7 = vld [vmem:[%s1258_s20 + $0x58] sm:$0xff]  ;;  %614 = vst [vmem:[%s1254_s19 + $0x48] sm:$0xff] %v613_v4  ;;  %v619_v8 = vld [vmem:[%s1258_s20 + $0x60] sm:$0xff]  ;;  %s1652_s25 = scalar_lea.vmem %s1342_s26, %s951_s24 [#allocation2]   ;;  %s1655_s27 = scalar_lea.vmem %s1375_s7, %s951_s24  }
  0xd7   : >> { %616 = vst [vmem:[%s1254_s19 + $0x50] sm:$0xff] %v615_v6  ;;  %618 = vst [vmem:[%s1254_s19 + $0x58] sm:$0xff] %v617_v7  ;;  %v621_v9 = vld [vmem:[%s1258_s20 + $0x68] sm:$0xff]  ;;  %v623_v10 = vld [vmem:[%s1258_s20 + $0x70] sm:$0xff] }
  0xd8   : >> { %620 = vst [vmem:[%s1254_s19 + $0x60] sm:$0xff] %v619_v8  ;;  %622 = vst [vmem:[%s1254_s19 + $0x68] sm:$0xff] %v621_v9  ;;  %v625_v11 = vld [vmem:[%s1258_s20 + $0x78] sm:$0xff]  ;;  %v627_v12 = vld [vmem:[%s1258_s20 + $0x80] sm:$0xff] }
  0xd9   : >> { %624 = vst [vmem:[%s1254_s19 + $0x70] sm:$0xff] %v623_v10  ;;  %v629_v13 = vld [vmem:[%s1258_s20 + $0x88] sm:$0xff]  ;;  %626 = vst [vmem:[%s1254_s19 + $0x78] sm:$0xff] %v625_v11  ;;  %v631_v14 = vld [vmem:[%s1258_s20 + $0x90] sm:$0xff] }
  0xda   : >> { %628 = vst [vmem:[%s1254_s19 + $0x80] sm:$0xff] %v627_v12  ;;  %630 = vst [vmem:[%s1254_s19 + $0x88] sm:$0xff] %v629_v13  ;;  %v633_v15 = vld [vmem:[%s1258_s20 + $0x98] sm:$0xff]  ;;  %v635_v16 = vld [vmem:[%s1258_s20 + $0xa0] sm:$0xff] }
  0xdb   : >> { %632 = vst [vmem:[%s1254_s19 + $0x90] sm:$0xff] %v631_v14  ;;  %634 = vst [vmem:[%s1254_s19 + $0x98] sm:$0xff] %v633_v15  ;;  %v637_v17 = vld [vmem:[%s1258_s20 + $0xa8] sm:$0xff]  ;;  %v639_v18 = vld [vmem:[%s1258_s20 + $0xb0] sm:$0xff] }
  0xdc   : >> { %636 = vst [vmem:[%s1254_s19 + $0xa0] sm:$0xff] %v635_v16  ;;  %v641_v19 = vld [vmem:[%s1258_s20 + $0xb8] sm:$0xff]  ;;  %638 = vst [vmem:[%s1254_s19 + $0xa8] sm:$0xff] %v637_v17  ;;  %v643_v20 = vld [vmem:[%s1258_s20 + $0xc0] sm:$0xff] }
  0xdd   : >> { %640 = vst [vmem:[%s1254_s19 + $0xb0] sm:$0xff] %v639_v18  ;;  %642 = vst [vmem:[%s1254_s19 + $0xb8] sm:$0xff] %v641_v19  ;;  %v645_v21 = vld [vmem:[%s1258_s20 + $0xc8] sm:$0xff]  ;;  %v647_v22 = vld [vmem:[%s1258_s20 + $0xd0] sm:$0xff] }
  0xde   : >> { %644 = vst [vmem:[%s1254_s19 + $0xc0] sm:$0xff] %v643_v20  ;;  %646 = vst [vmem:[%s1254_s19 + $0xc8] sm:$0xff] %v645_v21  ;;  %v649_v23 = vld [vmem:[%s1258_s20 + $0xd8] sm:$0xff]  ;;  %v651_v24 = vld [vmem:[%s1258_s20 + $0xe0] sm:$0xff] }
  0xdf   : >> { %648 = vst [vmem:[%s1254_s19 + $0xd0] sm:$0xff] %v647_v22  ;;  %v653_v25 = vld [vmem:[%s1258_s20 + $0xe8] sm:$0xff]  ;;  %650 = vst [vmem:[%s1254_s19 + $0xd8] sm:$0xff] %v649_v23  ;;  %v655_v26 = vld [vmem:[%s1258_s20 + $0xf0] sm:$0xff] }
  0xe0   : >> { %652 = vst [vmem:[%s1254_s19 + $0xe0] sm:$0xff] %v651_v24  ;;  %654 = vst [vmem:[%s1254_s19 + $0xe8] sm:$0xff] %v653_v25  ;;  %v657_v27 = vld [vmem:[%s1258_s20 + $0xf8] sm:$0xff]  ;;  %v659_v28 = vld [vmem:[%s1258_s20 + $0x100] sm:$0xff] }
  0xe1   : >> { %656 = vst [vmem:[%s1254_s19 + $0xf0] sm:$0xff] %v655_v26  ;;  %658 = vst [vmem:[%s1254_s19 + $0xf8] sm:$0xff] %v657_v27  ;;  %v661_v29 = vld [vmem:[%s1258_s20 + $0x108] sm:$0xff]  ;;  %v663_v30 = vld [vmem:[%s1258_s20 + $0x110] sm:$0xff] }
  0xe2   : >> { %660 = vst [vmem:[%s1254_s19 + $0x100] sm:$0xff] %v659_v28  ;;  %v665_v31 = vld [vmem:[%s1258_s20 + $0x118] sm:$0xff]  ;;  %662 = vst [vmem:[%s1254_s19 + $0x108] sm:$0xff] %v661_v29  ;;  %v667_v32 = vld [vmem:[%s1258_s20 + $0x120] sm:$0xff] }
  0xe3   : >> { %664 = vst [vmem:[%s1254_s19 + $0x110] sm:$0xff] %v663_v30  ;;  %666 = vst [vmem:[%s1254_s19 + $0x118] sm:$0xff] %v665_v31  ;;  %v669_v33 = vld [vmem:[%s1258_s20 + $0x128] sm:$0xff]  ;;  %v671_v34 = vld [vmem:[%s1258_s20 + $0x130] sm:$0xff] }
  0xe4   : >> { %668 = vst [vmem:[%s1254_s19 + $0x120] sm:$0xff] %v667_v32  ;;  %670 = vst [vmem:[%s1254_s19 + $0x128] sm:$0xff] %v669_v33  ;;  %v673_v35 = vld [vmem:[%s1258_s20 + $0x138] sm:$0xff]  ;;  %v675_v36 = vld [vmem:[%s1258_s20 + $0x140] sm:$0xff] }
  0xe5   : >> { %672 = vst [vmem:[%s1254_s19 + $0x130] sm:$0xff] %v671_v34  ;;  %v677_v37 = vld [vmem:[%s1258_s20 + $0x148] sm:$0xff]  ;;  %674 = vst [vmem:[%s1254_s19 + $0x138] sm:$0xff] %v673_v35  ;;  %v679_v38 = vld [vmem:[%s1258_s20 + $0x150] sm:$0xff] }
  0xe6   : >> { %676 = vst [vmem:[%s1254_s19 + $0x140] sm:$0xff] %v675_v36  ;;  %678 = vst [vmem:[%s1254_s19 + $0x148] sm:$0xff] %v677_v37  ;;  %v681_v39 = vld [vmem:[%s1258_s20 + $0x158] sm:$0xff]  ;;  %v683_v40 = vld [vmem:[%s1258_s20 + $0x160] sm:$0xff] }
  0xe7   : >> { %680 = vst [vmem:[%s1254_s19 + $0x150] sm:$0xff] %v679_v38  ;;  %682 = vst [vmem:[%s1254_s19 + $0x158] sm:$0xff] %v681_v39  ;;  %v685_v41 = vld [vmem:[%s1258_s20 + $0x168] sm:$0xff]  ;;  %v687_v42 = vld [vmem:[%s1258_s20 + $0x170] sm:$0xff] }
  0xe8   : >> { %684 = vst [vmem:[%s1254_s19 + $0x160] sm:$0xff] %v683_v40  ;;  %v689_v43 = vld [vmem:[%s1258_s20 + $0x178] sm:$0xff]  ;;  %686 = vst [vmem:[%s1254_s19 + $0x168] sm:$0xff] %v685_v41  ;;  %v691_v44 = vld [vmem:[%s1258_s20 + $0x180] sm:$0xff] }
  0xe9   : >> { %688 = vst [vmem:[%s1254_s19 + $0x170] sm:$0xff] %v687_v42  ;;  %690 = vst [vmem:[%s1254_s19 + $0x178] sm:$0xff] %v689_v43  ;;  %v693_v45 = vld [vmem:[%s1258_s20 + $0x188] sm:$0xff]  ;;  %v695_v46 = vld [vmem:[%s1258_s20 + $0x190] sm:$0xff] }
  0xea   : >> { %692 = vst [vmem:[%s1254_s19 + $0x180] sm:$0xff] %v691_v44  ;;  %694 = vst [vmem:[%s1254_s19 + $0x188] sm:$0xff] %v693_v45  ;;  %v697_v47 = vld [vmem:[%s1258_s20 + $0x198] sm:$0xff]  ;;  %v699_v48 = vld [vmem:[%s1258_s20 + $0x1a0] sm:$0xff] }
  0xeb   : >> { %696 = vst [vmem:[%s1254_s19 + $0x190] sm:$0xff] %v695_v46  ;;  %v701_v49 = vld [vmem:[%s1258_s20 + $0x1a8] sm:$0xff]  ;;  %698 = vst [vmem:[%s1254_s19 + $0x198] sm:$0xff] %v697_v47  ;;  %v703_v50 = vld [vmem:[%s1258_s20 + $0x1b0] sm:$0xff]  ;;  %591 = sbr.rel (!%p588_p8) target bundleno = 209 (0xd1), region = 172 }
  0xec   : >> { %700 = vst [vmem:[%s1254_s19 + $0x1a0] sm:$0xff] %v699_v48  ;;  %702 = vst [vmem:[%s1254_s19 + $0x1a8] sm:$0xff] %v701_v49  ;;  %v705_v51 = vld [vmem:[%s1258_s20 + $0x1b8] sm:$0xff]  ;;  %v707_v52 = vld [vmem:[%s1258_s20 + $0x1c0] sm:$0xff] }
  0xed   : >> { %704 = vst [vmem:[%s1254_s19 + $0x1b0] sm:$0xff] %v703_v50  ;;  %706 = vst [vmem:[%s1254_s19 + $0x1b8] sm:$0xff] %v705_v51  ;;  %v709_v53 = vld [vmem:[%s1258_s20 + $0x1c8] sm:$0xff]  ;;  %v711_v54 = vld [vmem:[%s1258_s20 + $0x1d0] sm:$0xff] }
  0xee   : >> { %708 = vst [vmem:[%s1254_s19 + $0x1c0] sm:$0xff] %v707_v52  ;;  %v713_v55 = vld [vmem:[%s1258_s20 + $0x1d8] sm:$0xff]  ;;  %710 = vst [vmem:[%s1254_s19 + $0x1c8] sm:$0xff] %v709_v53  ;;  %v715_v56 = vld [vmem:[%s1258_s20 + $0x1e0] sm:$0xff] }
  0xef   : >> { %712 = vst [vmem:[%s1254_s19 + $0x1d0] sm:$0xff] %v711_v54  ;;  %714 = vst [vmem:[%s1254_s19 + $0x1d8] sm:$0xff] %v713_v55  ;;  %v717_v57 = vld [vmem:[%s1258_s20 + $0x1e8] sm:$0xff]  ;;  %v719_v58 = vld [vmem:[%s1258_s20 + $0x1f0] sm:$0xff] }
  0xf0   : >> { %716 = vst [vmem:[%s1254_s19 + $0x1e0] sm:$0xff] %v715_v56  ;;  %718 = vst [vmem:[%s1254_s19 + $0x1e8] sm:$0xff] %v717_v57  ;;  %v721_v3 = vld [vmem:[%s1258_s20 + $0x1f8] sm:$0xff]  ;;  %s1802_s20 = smov %s1652_s25 }
  0xf1   : >> { %720 = vst [vmem:[%s1254_s19 + $0x1f0] sm:$0xff] %v719_v58  ;;  %722 = vst [vmem:[%s1254_s19 + $0x1f8] sm:$0xff] %v721_v3  ;;  %s1801_s19 = smov %s1655_s27 }
  0xf2 PF: > { %s1761_s28 = sand.u32 63, %s582_s14   ;;  %s965_s29 = sshll.u32 %s1585_s18, 13 }
  0xf3   : > { %s734_s30 = sshra.s32 %s965_s29, 4  ;;  %p956_p9 = scmp.le.s32.totalorder %s1761_s28, 0 }
  0xf4   : > { %s735_s3 = scalar_lea.vmem %s1342_s26, %s734_s30 [#allocation2]   ;;  %s738_s4 = scalar_lea.vmem %s1375_s7, %s734_s30  }
  0xf5   : > { %887 = sbr.rel (%p956_p9) target bundleno = 262 (0x106), region = 177  ;;  %s1268_s5 = smov (!%p956_p9), %s738_s4  }
  0xf6   : > { %s1272_s6 = smov (!%p956_p9), %s735_s3   ;;  %s1276_s8 = smov (!%p956_p9), 0  }
  0xf7   : > { %s1280_s22 = smov (!%p956_p9), 0  }
  0xfc LB: >> { %v750_v5 = vld [vmem:[%s1274_s6] sm:$0xff]  ;;  %s752_s14 = sadd.s32 1, %s1278_s8  ;;  %s744_s22 = sadd.s32 1, %s1282_s22   ;;  %s1282_s22 = sphi %s1280_s22, %s744_s22   ;;  %s1278_s8 = sphi %s1276_s8, %s1277_s8   ;;  %s1274_s6 = sphi %s1272_s6, %s757_s6   ;;  %s1270_s5 = sphi %s1268_s5, %s758_s5  }
  0xfd   : >> { %751 = vst [vmem:[%s1270_s5] sm:$0xff] %v750_v5  ;;  %p753_p10 = scmp.ge.s32.totalorder %s752_s14, %s1761_s28  ;;  %p743_p11 = scmp.ge.s32.totalorder %s744_s22, %s1761_s28 }
  0xff   : >> { %s1816_s14 = smov (%p753_p10, %s752_s14), 0  ;;  %746 = sbr.rel (!%p743_p11) target bundleno = 252 (0xfc), region = 183 }
 0x100   : >> { %s957_s18 = sshll.u32 %s1816_s14, 3  ;;  %s1277_s8 = smov %s1816_s14  }
 0x101   : >> { %s757_s6 = scalar_lea.vmem %s735_s3, %s957_s18 [#allocation2]   ;;  %s758_s5 = scalar_lea.vmem %s738_s4, %s957_s18  }
 0x106 PF: > { %s1286_s19 = smov 0  }
 0x107   : > { %s759_s20 = sshllo.u32 %s1286_s19, %s1381_s11 }
 0x108   : > { %v768_v59 = vld [vmem:[%s579_s15] sm:%s759_s20] }
 0x109   : > { %769 = vst [vmem:[%s581_s17] sm:%s759_s20] %v768_v59 }
 0x10a PF: > { %p959_p12 = scmp.ge.u32.totalorder %s1377_s9, 8 }
 0x10b   : > { %s1287_s21 = smov (!%p959_p12), 0  }
 0x10c   : > { %380 = sbr.rel (%p959_p12) target bundleno = 275 (0x113), region = 40  ;;  %s381_s23 = sshllo.u32 (!%p959_p12), %s1287_s21, %s1377_s9 }
 0x10d   : > { %v390_v60 = vld [vmem:[%s1342_s26] sm:%s381_s23] (!%p959_p12) }
 0x10e   : > { %391 = vst [vmem:[%s1375_s7] sm:%s381_s23] (!%p959_p12), %v390_v60 }
 0x113 PF: > { %p10_p13 = scmp.ge.s32.totalorder %s1316_s13, 4   ;;  %s1804_s9 = smov %s1214_s10 }
 0x114   : > { %s1805_s10 = smov %s1323_s16  ;;  %s1806_s11 = smov %s1316_s13 }
 0x115   :  { %12 = sbr.rel (!%p10_p13) target bundleno = 2 (0x2), region = 194 }

</bundles_post_ra>
